<compile_context>
chip_gen: v7x
topology: tpu7x:2x2x1
jax: 0.10.0
libtpu: 0.0.40
codegen_flags: <defaults>
</compile_context>

<pallas_src>
import functools

import jax
import jax.numpy as jnp
import numpy as np
from jax.experimental import pallas as pl
from jax.experimental.pallas import tpu as pltpu


# ----------------------------- hardware / budget helpers -----------------------------

_MiB = 1024 * 1024


def _round_up(n, m):
    return ((n + m - 1) // m) * m


def _scoped_vmem_limit():
    """Generation-aware scoped-VMEM budget (~3/4 of physical, capped at 100 MiB)."""
    default_cap = 64 * _MiB
    try:
        cap = int(getattr(pltpu.get_tpu_info(), "vmem_capacity_bytes", default_cap))
    except Exception:
        cap = default_cap
    if cap <= 0:
        cap = default_cap
    return min(cap * 3 // 4, 100 * _MiB)


def _padded_bytes(shape, dtype):
    """VMEM footprint of a buffer: minor dim pads to 128 lanes, 2nd-minor to the sublane tile."""
    dt = jnp.dtype(dtype)
    dims = [int(d) for d in shape]
    if len(dims) < 2:
        total = 1
        for d in dims:
            total *= d
        return _round_up(max(total, 1), 128) * dt.itemsize
    sub = {4: 8, 2: 16, 1: 32}.get(dt.itemsize, 8)
    lead = 1
    for d in dims[:-2]:
        lead *= d
    return lead * _round_up(dims[-2], sub) * _round_up(dims[-1], 128) * dt.itemsize


def _pick_bt_fused(b, c, t, dtype, soft_budget, hard_budget, cap=8):
    """Largest batch tile (divisor of B, <= cap rows for the unrolled loop) that fits the budget."""
    bt = None
    for d in range(min(b, cap), 0, -1):
        if b % d == 0 and _padded_bytes((d, c, t), dtype) <= soft_budget:
            bt = d
            break
    if bt is None:
        if _padded_bytes((1, c, t), dtype) <= hard_budget:
            bt = 1
        else:
            return None
    # Keep >= 2 grid steps when possible so a v7x megacore (2 TensorCores) can split the work.
    # Cheap on single-core parts too (just one extra tiny grid step), so no core-count query.
    if b >= 2 and b // bt < 2:
        for d in range(bt - 1, 0, -1):
            if b % d == 0 and b // d >= 2:
                bt = d
                break
    return bt


def _pick_tc(c, t, dtype, budget):
    """T chunk for the fallback: full T if it fits (or T <= 128), else a multiple of 128."""
    if t <= 128 or _padded_bytes((1, c, t), dtype) <= budget:
        return t
    tc = 128
    for cand in (4096, 2048, 1024, 512, 256, 128):
        if cand <= t and _padded_bytes((1, c, cand), dtype) <= budget:
            tc = cand
            break
    return tc


def _pick_bt(b, c, tc, dtype, budget):
    """Largest divisor of B whose (bt, C, tc) block fits the budget (fallback passes)."""
    for bt in range(b, 0, -1):
        if b % bt == 0 and _padded_bytes((bt, c, tc), dtype) <= budget:
            return bt
    return 1


# ----------------------------------- fused kernel -----------------------------------

def _se_fused_kernel(x_ref, w1_ref, w2_ref, o_ref, *, inv_t):
    """out = x * sigmoid(W2 @ relu(W1 @ mean_t(x))) for one resident (bt, C, T) block."""
    bt = x_ref.shape[0]
    t = x_ref.shape[-1]

    # Squeeze: per-row temporal mean via an MXU dot against a ones vector (keeps VPU/XLU free).
    ones_t = jnp.ones((t, 1), dtype=x_ref.dtype)
    cols = [
        jnp.dot(x_ref[i], ones_t, preferred_element_type=jnp.float32)   # (C, 1) f32
        for i in range(bt)
    ]
    pooled_t = jnp.concatenate(cols, axis=1) * inv_t                    # (C, bt) f32

    # Excitation MLP, batched across the bt rows.  C stays on the sublane axis end-to-end
    # (it is the contraction dim of both dots and the broadcast dim of the final multiply),
    # so no vreg relayouts are required anywhere in this kernel.
    w1 = w1_ref[...].astype(jnp.float32)                                # (H, C)  torch layout
    w2 = w2_ref[...].astype(jnp.float32)                                # (C, H)  torch layout
    h = jnp.maximum(jnp.dot(w1, pooled_t, preferred_element_type=jnp.float32), 0.0)  # (H, bt)
    gate_t = jax.nn.sigmoid(jnp.dot(w2, h, preferred_element_type=jnp.float32))      # (C, bt)

    # Scale: out[i] = x[i] * gate[:, i]; multiply in the input dtype (no f32 copy of the tile).
    for i in range(bt):
        g_col = gate_t[:, i:i + 1].astype(x_ref.dtype)                  # (C, 1)
        o_ref[i] = (x_ref[i] * g_col).astype(o_ref.dtype)


def _se_fused(x, w1, w2, *, bt, vmem_limit):
    b, c, t = x.shape
    h = w1.shape[0]
    n_bt = b // bt
    return pl.pallas_call(
        functools.partial(_se_fused_kernel, inv_t=1.0 / t),
        out_shape=jax.ShapeDtypeStruct((b, c, t), x.dtype),
        grid_spec=pltpu.PrefetchScalarGridSpec(
            num_scalar_prefetch=0,
            grid=(n_bt,),
            in_specs=[
                pl.BlockSpec((bt, c, t), lambda i: (i, 0, 0)),
                pl.BlockSpec((h, c), lambda i: (0, 0)),     # W1, resident every step
                pl.BlockSpec((c, h), lambda i: (0, 0)),     # W2, resident every step
            ],
            out_specs=pl.BlockSpec((bt, c, t), lambda i: (i, 0, 0)),
        ),
        compiler_params=pltpu.CompilerParams(
            dimension_semantics=("parallel",),
            vmem_limit_bytes=vmem_limit),
    )(x, w1, w2)


# ------------------------- two-pass fallback (very large C*T) -------------------------

def _se_gate_kernel(x_ref, w1t_ref, w2t_ref, gate_ref, *, inv_t, t_total, tc):
    """Accumulate sum_t(x) into the resident (bt, 1, C) output block; finalize mean->MLP->sigmoid."""
    k = pl.program_id(1)

    @pl.when(k == 0)
    def _init():
        gate_ref[...] = jnp.zeros_like(gate_ref)

    xb = x_ref[...]                                                     # (bt, C, tc)
    if t_total % tc != 0:
        # Ragged final chunk: mask out-of-range lanes before accumulating.
        lane = jax.lax.broadcasted_iota(jnp.int32, xb.shape, 2)
        xb = jnp.where(k * tc + lane < t_total, xb, jnp.zeros_like(xb))
    # Note: left as an XLU lane reduction (proven lowering); this pass is DMA-bound so the
    # conditional "move the reduce to the MXU" optimization is not needed here.
    gate_ref[...] += jnp.sum(xb, axis=-1, dtype=jnp.float32)[:, None, :]

    @pl.when(k == pl.num_programs(1) - 1)
    def _finalize():
        acc = gate_ref[...]                                             # (bt, 1, C) f32
        pooled = acc[:, 0, :] * inv_t                                   # (bt, C), true 1/T
        hh = jnp.maximum(jnp.dot(pooled, w1t_ref[...].astype(jnp.float32),
                                 preferred_element_type=jnp.float32), 0.0)       # (bt, H)
        g = jax.nn.sigmoid(jnp.dot(hh, w2t_ref[...].astype(jnp.float32),
                                   preferred_element_type=jnp.float32))          # (bt, C)
        gate_ref[...] = g[:, None, :]


def _se_scale_kernel(x_ref, s_ref, o_ref):
    """out = x * s with s: (bt, C, 1) broadcast along the T chunk (input-dtype multiply)."""
    s = s_ref[...].astype(x_ref.dtype)
    o_ref[...] = (x_ref[...] * s).astype(o_ref.dtype)


def _se_two_pass(x, w1, w2, *, vmem_limit):
    b, c, t = x.shape
    hdim = w1.shape[0]
    dt = jnp.dtype(x.dtype)

    # Pre-transpose the weights once in the wrapper (no in-kernel .T / XLU relayout per step).
    w1t = jnp.transpose(w1)   # (C, H)
    w2t = jnp.transpose(w2)   # (H, C)
    w_bytes = _padded_bytes((c, hdim), w1t.dtype) + _padded_bytes((hdim, c), w2t.dtype)

    # ---- Pass 1: gate = sigmoid(relu(mean_t(x) @ W1^T) @ W2^T) -> (B, 1, C) f32 ----
    # Only x is streamed (weights + gate output are tiny/resident) -> generous per-block budget.
    p1_budget = max(1, vmem_limit * 3 // 4 - 2 * w_bytes) // 3
    tc1 = _pick_tc(c, t, dt, p1_budget)
    bt1 = _pick_bt(b, c, tc1, dt, p1_budget)
    gate = pl.pallas_call(
        functools.partial(_se_gate_kernel, inv_t=1.0 / t, t_total=t, tc=tc1),
        out_shape=jax.ShapeDtypeStruct((b, 1, c), jnp.float32),
        grid_spec=pltpu.PrefetchScalarGridSpec(
            num_scalar_prefetch=0,
            grid=(b // bt1, pl.cdiv(t, tc1)),
            in_specs=[
                pl.BlockSpec((bt1, c, tc1), lambda i, k: (i, 0, k)),
                pl.BlockSpec((c, hdim), lambda i, k: (0, 0)),
                pl.BlockSpec((hdim, c), lambda i, k: (0, 0)),
            ],
            out_specs=pl.BlockSpec((bt1, 1, c), lambda i, k: (i, 0, 0)),
        ),
        compiler_params=pltpu.CompilerParams(
            dimension_semantics=("parallel", "arbitrary"),
            vmem_limit_bytes=vmem_limit),
    )(x, w1t, w2t)

    # Free row-major re-view (B, 1, C) -> (B, C, 1) so the gate broadcasts over the T lanes.
    gate = gate.reshape(b, c, 1)

    # ---- Pass 2: out = x * gate; streams x in and out (4 live blocks when double-buffered) ----
    p2_budget = (vmem_limit * 3 // 4) // 5
    tc2 = _pick_tc(c, t, dt, p2_budget)
    bt2 = _pick_bt(b, c, tc2, dt, p2_budget)
    out = pl.pallas_call(
        _se_scale_kernel,
        out_shape=jax.ShapeDtypeStruct((b, c, t), x.dtype),
        grid_spec=pltpu.PrefetchScalarGridSpec(
            num_scalar_prefetch=0,
            grid=(b // bt2, pl.cdiv(t, tc2)),
            in_specs=[
                pl.BlockSpec((bt2, c, tc2), lambda i, k: (i, 0, k)),
                pl.BlockSpec((bt2, c, 1), lambda i, k: (i, 0, 0)),
            ],
            out_specs=pl.BlockSpec((bt2, c, tc2), lambda i, k: (i, 0, k)),
        ),
        compiler_params=pltpu.CompilerParams(
            dimension_semantics=("parallel", "parallel"),
            vmem_limit_bytes=vmem_limit),
    )(x, gate)
    return out


# ----------------------------------- entry point -----------------------------------

def se_block(x, w1, w2):
    """SEBlock forward.  x: (B, C, T); w1: (C//r, C); w2: (C, C//r) (torch nn.Linear layout)."""
    b, c, t = x.shape
    h = w1.shape[0]
    assert w1.shape == (h, c), w1.shape
    assert w2.shape == (c, h), w2.shape

    vmem_limit = _scoped_vmem_limit()
    dt = jnp.dtype(x.dtype)
    w_bytes = _padded_bytes((h, c), w1.dtype) + _padded_bytes((c, h), w2.dtype)

    # Fused-path budget: x in + out blocks, each double-buffered (4 live blocks) + resident
    # weights, with >= 25% of the scoped limit left as slack.  The soft cap keeps per-step
    # blocks modest (fewer unrolled rows / bounded per-step latency); the hard budget still
    # allows a single bt=1 block up to the full limit before falling back to two passes.
    hard_budget = (vmem_limit * 3 // 4 - 2 * w_bytes) // 4
    soft_budget = min(hard_budget, 4 * _MiB)
    bt = _pick_bt_fused(b, c, t, dt, soft_budget, hard_budget)
    if bt is not None:
        return _se_fused(x, w1, w2, bt=bt, vmem_limit=vmem_limit)
    return _se_two_pass(x, w1, w2, vmem_limit=vmem_limit)


# ----------------------------------- reference -----------------------------------

def se_block_ref(x, w1, w2):
    xf = x.astype(jnp.float32)
    pooled = jnp.mean(xf, axis=-1)
    hh = jnp.maximum(pooled @ w1.astype(jnp.float32).T, 0.0)
    s = jax.nn.sigmoid(hh @ w2.astype(jnp.float32).T)
    return (xf * s[:, :, None]).astype(x.dtype)


if __name__ == "__main__":
    # Small shapes consistent with the module: channel divisible by r=16.
    B, C, T = 2, 64, 16
    R = 16
    H = C // R  # = 4

    key = jax.random.PRNGKey(0)
    kx, k1, k2 = jax.random.split(key, 3)

    x = jax.random.normal(kx, (B, C, T), dtype=jnp.float32)
    # nn.Linear(C, C//r, bias=False).weight and nn.Linear(C//r, C, bias=False).weight layouts.
    w1 = jax.random.normal(k1, (H, C), dtype=jnp.float32) * 0.1
    w2 = jax.random.normal(k2, (C, H), dtype=jnp.float32) * 0.1

    out = jax.block_until_ready(se_block(x, w1, w2))
    ref = jax.block_until_ready(se_block_ref(x, w1, w2))
    np.testing.assert_allclose(np.asarray(out), np.asarray(ref), rtol=2e-5, atol=2e-5)

    print("KERNEL_OK")
</pallas_src>

<mosaic_0001>
module attributes {stable_mosaic.version = 11 : i64} {
  func.func @_se_fused_kernel(%arg0: i32, %arg1: memref<1x64x16xf32, #tpu.memory_space<vmem>>, %arg2: memref<4x64xf32, #tpu.memory_space<vmem>>, %arg3: memref<64x4xf32, #tpu.memory_space<vmem>>, %arg4: memref<1x64x16xf32, #tpu.memory_space<vmem>>) attributes {dimension_semantics = [#tpu.dimension_semantics<parallel>], iteration_bounds = array<i64: 2>, scalar_prefetch = 0 : i64, scratch_operands = 0 : i64, tpu.core_type = #tpu.core_type<tc>, window_params = [{transform_indices = @transform_0, window_bounds = array<i64: 1, 64, 16>}, {pipeline_mode = #tpu.pipeline_mode<synchronous>, transform_indices = @transform_1, window_bounds = array<i64: 4, 64>}, {pipeline_mode = #tpu.pipeline_mode<synchronous>, transform_indices = @transform_2, window_bounds = array<i64: 64, 4>}, {transform_indices = @transform_3, window_bounds = array<i64: 1, 64, 16>}]} {
    %cst = arith.constant 1.000000e+00 : f32
    %0 = vector.broadcast %cst : f32 to vector<16x1xf32>
    %c0 = arith.constant 0 : index
    %c0_0 = arith.constant 0 : index
    %c0_1 = arith.constant 0 : index
    %1 = vector.load %arg1[%c0, %c0_0, %c0_1] : memref<1x64x16xf32, #tpu.memory_space<vmem>>, vector<1x64x16xf32>
    %2 = vector.shape_cast %1 : vector<1x64x16xf32> to vector<64x16xf32>
    %cst_2 = arith.constant dense<0.000000e+00> : vector<64x1xf32>
    %3 = tpu.matmul %2, %0, %cst_2 {dimension_numbers = #tpu.dot_dimension_numbers<[1], [0], [0], [1], [0, 0, 1, 1], [], []>} : vector<64x16xf32>, vector<16x1xf32>, vector<64x1xf32> -> vector<64x1xf32>
    %cst_3 = arith.constant 6.250000e-02 : f32
    %4 = vector.broadcast %cst_3 : f32 to vector<64x1xf32>
    %5 = arith.mulf %3, %4 : vector<64x1xf32>
    %c0_4 = arith.constant 0 : index
    %c0_5 = arith.constant 0 : index
    %6 = vector.load %arg2[%c0_4, %c0_5] : memref<4x64xf32, #tpu.memory_space<vmem>>, vector<4x64xf32>
    %c0_6 = arith.constant 0 : index
    %c0_7 = arith.constant 0 : index
    %7 = vector.load %arg3[%c0_6, %c0_7] : memref<64x4xf32, #tpu.memory_space<vmem>>, vector<64x4xf32>
    %cst_8 = arith.constant dense<0.000000e+00> : vector<4x1xf32>
    %8 = tpu.matmul %6, %5, %cst_8 {dimension_numbers = #tpu.dot_dimension_numbers<[1], [0], [0], [1], [0, 0, 1, 1], [], []>} : vector<4x64xf32>, vector<64x1xf32>, vector<4x1xf32> -> vector<4x1xf32>
    %cst_9 = arith.constant 0.000000e+00 : f32
    %9 = vector.broadcast %cst_9 : f32 to vector<4x1xf32>
    %10 = arith.maximumf %8, %9 : vector<4x1xf32>
    %cst_10 = arith.constant dense<0.000000e+00> : vector<64x1xf32>
    %11 = tpu.matmul %7, %10, %cst_10 {dimension_numbers = #tpu.dot_dimension_numbers<[1], [0], [0], [1], [0, 0, 1, 1], [], []>} : vector<64x4xf32>, vector<4x1xf32>, vector<64x1xf32> -> vector<64x1xf32>
    %12 = arith.negf %11 : vector<64x1xf32>
    %13 = math.exp %12 : vector<64x1xf32>
    %cst_11 = arith.constant 1.000000e+00 : f32
    %14 = vector.broadcast %cst_11 : f32 to vector<64x1xf32>
    %15 = arith.addf %14, %13 : vector<64x1xf32>
    %16 = arith.divf %14, %15 : vector<64x1xf32>
    %c0_12 = arith.constant 0 : index
    %c0_13 = arith.constant 0 : index
    %c0_14 = arith.constant 0 : index
    %17 = vector.load %arg1[%c0_12, %c0_13, %c0_14] : memref<1x64x16xf32, #tpu.memory_space<vmem>>, vector<1x64x16xf32>
    %18 = vector.shape_cast %17 : vector<1x64x16xf32> to vector<64x16xf32>
    %19 = vector.broadcast %16 : vector<64x1xf32> to vector<64x16xf32>
    %20 = arith.mulf %18, %19 : vector<64x16xf32>
    %c0_15 = arith.constant 0 : index
    %c0_16 = arith.constant 0 : index
    %c0_17 = arith.constant 0 : index
    %21 = vector.load %arg4[%c0_15, %c0_16, %c0_17] : memref<1x64x16xf32, #tpu.memory_space<vmem>>, vector<1x64x16xf32>
    %22 = vector.shape_cast %21 : vector<1x64x16xf32> to vector<64x16xf32>
    %23 = vector.shape_cast %20 : vector<64x16xf32> to vector<1x64x16xf32>
    tpu.vector_store %arg4[%c0_15, %c0_16, %c0_17], %23 {strides = array<i32>} : memref<1x64x16xf32, #tpu.memory_space<vmem>>, vector<1x64x16xf32>,
    return
  }
  func.func @transform_0(%arg0: i32) -> (i32, i32, i32) {
    %c0_i32 = arith.constant 0 : i32
    %c0_i32_0 = arith.constant 0 : i32
    %c0_i32_1 = arith.constant 0 : i32
    return %arg0, %c0_i32, %c0_i32_0 : i32, i32, i32
  }
  func.func @transform_1(%arg0: i32) -> (i32, i32) {
    %c0_i32 = arith.constant 0 : i32
    %c0_i32_0 = arith.constant 0 : i32
    %c0_i32_1 = arith.constant 0 : i32
    return %c0_i32, %c0_i32_0 : i32, i32
  }
  func.func @transform_2(%arg0: i32) -> (i32, i32) {
    %c0_i32 = arith.constant 0 : i32
    %c0_i32_0 = arith.constant 0 : i32
    %c0_i32_1 = arith.constant 0 : i32
    return %c0_i32, %c0_i32_0 : i32, i32
  }
  func.func @transform_3(%arg0: i32) -> (i32, i32, i32) {
    %c0_i32 = arith.constant 0 : i32
    %c0_i32_0 = arith.constant 0 : i32
    %c0_i32_1 = arith.constant 0 : i32
    return %arg0, %c0_i32, %c0_i32_0 : i32, i32, i32
  }
}

</mosaic_0001>

<bundles_post_ra>
// kernel: tpu_custom_call.1
= control target key start
LH: loop header
LB: loop body
LE: loop exit
PB: predicated region body
PF: predicated region fallthrough
CT: control target
= control target key end

     0   :  { %s904_s12 = smov 0   ;;  %s1011_s0 = inlined_call_operand.vmem [shape: f32[2,64,16], index: 0, kind: input, shape index: {}]   ;;  %s1012_s1 = inlined_call_operand.vmem [shape: f32[4,64], index: 1, kind: input, shape index: {}]   ;;  %s1013_s2 = inlined_call_operand.vmem [shape: f32[64,4], index: 2, kind: input, shape index: {}]   ;;  %s1014_s3 = inlined_call_operand.vmem [shape: f32[2,64,16], index: 3, kind: output, shape index: {}]  }
   0x1 LB: > { %s694_s13 = sadd.s32 4294967295, %s877_s12   ;;  %p698_p0 = scmp.ge.s32.totalorder %s877_s12, 1  ;;  %s877_s12 = sphi %s904_s12, %s13_s12  }
   0x2   : > { %p137_p1 = scmp.lt.s32.totalorder %s877_s12, 3 }
   0x4   : > { %p138_p2 = pnand %p698_p0, %p137_p1 }
   0x5   : > { %p161_p3 = scmp.lt.s32.totalorder (!%p138_p2), %s694_s13, 1  ;;  %v879_v0 = vmov (!%p138_p2), 1.0|1.0   ;;  %vm179_vm0 = vcmask (!%p138_p2), 130048   ;;  %v880_v9 = vmov (!%p138_p2), 0.0|0.0   ;;  %vm881_vm1 = vmmov (!%p138_p2), 0  }
   0x6   : > { %141 = sbr.rel (%p138_p2) target bundleno = 851 (0x353), region = 32  ;;  %810 = vmatprep.subr.bf16.mxu1 (!%p138_p2), %v879_v0  ;;  %v882_v10 = vmov (!%p138_p2), 0.0   ;;  %v317_v31 = vld [vmem:[%s1012_s1] sm:$0xf] (!%p138_p2)  ;;  %vm326_vm2 = vcmask (!%p138_p2), 523264   ;;  %vm401_vm3 = vcmask (!%p138_p2), 31744  }
   0x7   : > { %811 = vmatpush3.bf16.msra.mxu1 (!%p138_p2), %v879_v0  ;;  %v318_v32 = vld [vmem:[%s1013_s2] sm:$0xff] (!%p138_p2)  ;;  %vm426_vm4 = vcmask (!%p138_p2), 1043456   ;;  %v319_v36 = vld [vmem:[%s1013_s2 + $0x8] sm:$0xff] (!%p138_p2)  ;;  %v320_v37 = vld [vmem:[%s1013_s2 + $0x10] sm:$0xff] (!%p138_p2)  ;;  %v883_v43 = vmov (!%p138_p2), 0  }
   0x8   : > { %812 = vmatprep.subr.bf16.mxu1 (!%p138_p2), %v880_v9  ;;  %798 = vmatprep.mubr.msk.f32.mxu0 (!%p138_p2), %vm401_vm3, %v318_v32  ;;  %v321_v38 = vld [vmem:[%s1013_s2 + $0x18] sm:$0xff] (!%p138_p2)  ;;  %v322_v39 = vld [vmem:[%s1013_s2 + $0x20] sm:$0xff] (!%p138_p2)  ;;  %v323_v40 = vld [vmem:[%s1013_s2 + $0x28] sm:$0xff] (!%p138_p2) }
   0x9   : > { %v324_v41 = vld [vmem:[%s1013_s2 + $0x30] sm:$0xff] (!%p138_p2)  ;;  %v325_v42 = vld [vmem:[%s1013_s2 + $0x38] sm:$0xff] (!%p138_p2)  ;;  %837 = vset.pattern.permute.xlu0 (!%p138_p2), %v883_v43  ;;  %838 = vset.pattern.permute.xlu1 (!%p138_p2), %v883_v43 }
   0xd   : > { %s1016_s13 = smov (!%p161_p3, %s694_s13), 1 }
   0xe   : > { %s731_s14 = sshll.u32 %s1016_s13, 6 }
   0xf   : > { %s165_s17 = scalar_lea.vmem %s1011_s0, %s731_s14  ;;  %s170_s11 = scalar_lea.vmem %s1014_s3, %s731_s14 }
  0x10   : > { %v920_v1 = vld [vmem:[%s165_s17] sm:$0xff]  ;;  %v922_v2 = vld [vmem:[%s165_s17 + $0x8] sm:$0xff]  ;;  %v924_v3 = vld [vmem:[%s165_s17 + $0x10] sm:$0xff] }
  0x11   : > { %765 = vmatprep.mubr.msk.f32.mxu1 %vm179_vm0, %v920_v1  ;;  %v932_v4 = vld [vmem:[%s165_s17 + $0x18] sm:$0xff]  ;;  %v934_v5 = vld [vmem:[%s165_s17 + $0x20] sm:$0xff]  ;;  %v940_v6 = vld [vmem:[%s165_s17 + $0x28] sm:$0xff] }
  0x12   : > { %766 = vmatmul.mubr.msk.f32.vlgmr.msra.gmra.mrb[0].mxu1 %vm179_vm0, %v922_v2  ;;  %v942_v7 = vld [vmem:[%s165_s17 + $0x30] sm:$0xff]  ;;  %v948_v8 = vld [vmem:[%s165_s17 + $0x38] sm:$0xff] }
  0x13   : > { %768 = vmatprep.mubr.msk.f32.mxu1 %vm179_vm0, %v924_v3 }
  0x16   : > { %769 = vmatmul.mubr.msk.f32.gmra.mrb[2].mxu1 %vm179_vm0, %v932_v4 }
  0x17   : > { %771 = vmatprep.mubr.msk.f32.mxu1 %vm179_vm0, %v934_v5 }
  0x1a   : > { %772 = vmatmul.mubr.msk.f32.gmra.mrb[4].mxu1 %vm179_vm0, %v940_v6 }
  0x1b   : > { %774 = vmatprep.mubr.msk.f32.mxu1 %vm179_vm0, %v942_v7 }
  0x1e   : > { %775 = vmatmul.mubr.msk.f32.gmra.mrb[6].mxu1 %vm179_vm0, %v948_v8 }
  0x1f   : > { %793 = vmatprep.mubr.msk.f32.mxu1 %vm881_vm1, %v882_v10 }
  0xe5   : > { %v767_v11 = vpop.f32.mrb[0].mxu1 }
  0xe6   : > { %v310_v12 = vmul.f32 0.0625, %v767_v11  ;;  %v270_v13 = vpop.f32.mrb[1].mxu1 }
  0xe7   : > { %v309_v14 = vmul.f32 0.0625, %v270_v13 }
  0xe9   : > { %v813_v15 = vpack.c.bf16 %v310_v12, %v309_v14  ;;  %v770_v16 = vpop.f32.mrb[2].mxu1 }
  0xea   : > { %v312_v17 = vmul.f32 0.0625, %v770_v16  ;;  %v280_v18 = vpop.f32.mrb[3].mxu1 }
  0xeb   : > { %v311_v19 = vmul.f32 0.0625, %v280_v18  ;;  %814 = vmatpush3.bf16.msra.mxu1 %v813_v15 }
  0xec   : > { %815 = vmatprep.subr.bf16.mxu1 %v880_v9 }
  0xed   : > { %v816_v20 = vpack.c.bf16 %v312_v17, %v311_v19  ;;  %v773_v21 = vpop.f32.mrb[4].mxu1 }
  0xee   : > { %v314_v22 = vmul.f32 0.0625, %v773_v21  ;;  %v290_v23 = vpop.f32.mrb[5].mxu1 }
  0xef   : > { %v313_v24 = vmul.f32 0.0625, %v290_v23  ;;  %817 = vmatpush3.bf16.msra.mxu1 %v816_v20 }
  0xf0   : > { %818 = vmatprep.subr.bf16.mxu1 %v880_v9 }
  0xf1   : > { %v819_v25 = vpack.c.bf16 %v314_v22, %v313_v24  ;;  %v776_v26 = vpop.f32.mrb[6].mxu1 }
  0xf2   : > { %v316_v27 = vmul.f32 0.0625, %v776_v26  ;;  %v300_v28 = vpop.f32.mrb[7].mxu1 }
  0xf3   : > { %v315_v29 = vmul.f32 0.0625, %v300_v28  ;;  %820 = vmatpush3.bf16.msra.mxu1 %v819_v25 }
  0xf4   : > { %821 = vmatprep.subr.bf16.mxu1 %v880_v9 }
  0xf5   : > { %v822_v30 = vpack.c.bf16 %v316_v27, %v315_v29 }
  0xf7   : > { %823 = vmatpush3.bf16.msra.mxu1 %v822_v30 }
  0xfa   : > { %794 = vmatmul.mubr.msk.f32.vlgmr.msra.gmra.mrb[8].mxu1 %vm326_vm2, %v317_v31 }
 0x1cd   : > { %v396_v33 = vpop.f32.mrb[8].mxu1 }
 0x1ce   : > { %v400_v34 = vmax.f32 %v396_v33, 0.0  ;;  %v795_v35 = vpop.f32.mrb[9].mxu1 }
 0x1d0   : > { %796 = vmatprep.subr.msk.mxu0 %vm426_vm4, %v400_v34 }
 0x1d1   : > { %797 = vmatpush3.msk.msra.mxu0 %vm426_vm4, %v400_v34 }
 0x1d2   : > { %799 = vmatmul.mubr.msk.f32.vlgmr.msra.gmra.mrb[0].mxu0 %vm401_vm3, %v319_v36 }
 0x1d3   : > { %801 = vmatprep.mubr.msk.f32.mxu0 %vm401_vm3, %v320_v37 }
 0x1d6   : > { %802 = vmatmul.mubr.msk.f32.gmra.mrb[2].mxu0 %vm401_vm3, %v321_v38 }
 0x1d7   : > { %804 = vmatprep.mubr.msk.f32.mxu0 %vm401_vm3, %v322_v39 }
 0x1da   : > { %805 = vmatmul.mubr.msk.f32.gmra.mrb[4].mxu0 %vm401_vm3, %v323_v40 }
 0x1db   : > { %807 = vmatprep.mubr.msk.f32.mxu0 %vm401_vm3, %v324_v41 }
 0x1de   : > { %808 = vmatmul.mubr.msk.f32.gmra.mrb[6].mxu0 %vm401_vm3, %v325_v42 }
 0x2a5   : > { %v800_v44 = vpop.f32.mrb[0].mxu0 }
 0x2a6   : > { %v722_v45 = vmul.f32 -1.442695, %v800_v44  ;;  %v496_v46 = vpop.f32.mrb[1].mxu0 }
 0x2a7   : > { %v721_v47 = vmul.f32 -1.442695, %v496_v46 }
 0x2a8   : > { %839 = vpow2.f32 %v722_v45 }
 0x2a9   : > { %841 = vpow2.f32 %v721_v47  ;;  %v803_v48 = vpop.f32.mrb[2].mxu0 }
 0x2aa   : > { %v724_v49 = vmul.f32 -1.442695, %v803_v48  ;;  %v506_v50 = vpop.f32.mrb[3].mxu0 }
 0x2ab   : > { %v723_v51 = vmul.f32 -1.442695, %v506_v50 }
 0x2ac   : > { %843 = vpow2.f32 %v724_v49 }
 0x2ad   : > { %845 = vpow2.f32 %v723_v51  ;;  %v806_v52 = vpop.f32.mrb[4].mxu0 }
 0x2ae   : > { %v726_v53 = vmul.f32 -1.442695, %v806_v52  ;;  %v516_v54 = vpop.f32.mrb[5].mxu0 }
 0x2af   : > { %v725_v55 = vmul.f32 -1.442695, %v516_v54 }
 0x2b0   : > { %847 = vpow2.f32 %v726_v53 }
 0x2b1   : > { %849 = vpow2.f32 %v725_v55  ;;  %v809_v56 = vpop.f32.mrb[6].mxu0 }
 0x2b2   : > { %v840_v57 = vpop.eup %839  ;;  %v728_v58 = vmul.f32 -1.442695, %v809_v56  ;;  %v526_v59 = vpop.f32.mrb[7].mxu0 }
 0x2b3   : > { %v842_v60 = vpop.eup %841  ;;  %v560_v61 = vadd.f32 1.0, %v840_v57  ;;  %v727_v62 = vmul.f32 -1.442695, %v526_v59 }
 0x2b4   : > { %v559_v63 = vadd.f32 1.0, %v842_v60  ;;  %851 = vpow2.f32 %v728_v58 }
 0x2b5   : > { %853 = vrcp.f32 %v560_v61 }
 0x2b6   : > { %v844_v0 = vpop.eup %843  ;;  %855 = vpow2.f32 %v727_v62 }
 0x2b7   : > { %v846_v9 = vpop.eup %845  ;;  %v562_v10 = vadd.f32 1.0, %v844_v0  ;;  %857 = vrcp.f32 %v559_v63 }
 0x2b8   : > { %v561_v11 = vadd.f32 1.0, %v846_v9 }
 0x2b9   : > { %859 = vrcp.f32 %v562_v10 }
 0x2ba   : > { %v848_v12 = vpop.eup %847  ;;  %861 = vrcp.f32 %v561_v11 }
 0x2bb   : > { %v850_v13 = vpop.eup %849  ;;  %v564_v14 = vadd.f32 1.0, %v848_v12 }
 0x2bc   : > { %v563_v15 = vadd.f32 1.0, %v850_v13 }
 0x2be   : > { %v852_v16 = vpop.eup %851  ;;  %863 = vrcp.f32 %v563_v15 }
 0x2bf   : > { %v854_v17 = vpop.eup %853  ;;  %865 = vrcp.f32 %v564_v14  ;;  %v566_v18 = vadd.f32 1.0, %v852_v16 }
 0x2c0   : > { %590 = vperm.xlu0 %837, %v854_v17   ;;  %v856_v19 = vpop.eup %855 }
 0x2c1   : > { %v858_v20 = vpop.eup %857  ;;  %v565_v21 = vadd.f32 1.0, %v856_v19  ;;  %867 = vrcp.f32 %v566_v18 }
 0x2c3   : > { %v860_v22 = vpop.eup %859  ;;  %869 = vrcp.f32 %v565_v21 }
 0x2c4   : > { %585 = vperm.xlu0 %837, %v858_v20   ;;  %600 = vperm.xlu1 %838, %v860_v22   ;;  %v862_v23 = vpop.eup %861 }
 0x2c8   : > { %v864_v24 = vpop.eup %863  ;;  %595 = vperm.xlu1 %838, %v862_v23  }
 0x2c9   : > { %v866_v25 = vpop.eup %865  ;;  %605 = vperm.xlu0 %837, %v864_v24  }
 0x2cb   : > { %v868_v26 = vpop.eup %867 }
 0x2cc   : > { %610 = vperm.xlu1 %838, %v866_v25  }
 0x2cd   : > { %v870_v27 = vpop.eup %869 }
 0x2ce   : > { %615 = vperm.xlu0 %837, %v870_v27  }
 0x2d0   : > { %620 = vperm.xlu1 %838, %v868_v26  }
 0x33f   : > { %v591_v28 = vpop.permute.xlu0 %590 }
 0x340   : > { %v624_v29 = vmul.f32 %v591_v28, %v922_v2 }
 0x342   : > { %632 = vst.msk [vmem:[%s170_s11 + $0x8] sm:$0xff] %vm179_vm0, %v624_v29 }
 0x343   : > { %v586_v30 = vpop.permute.xlu0 %585  ;;  %v601_v31 = vpop.permute.xlu1 %600 }
 0x344   : > { %v623_v32 = vmul.f32 %v586_v30, %v920_v1  ;;  %v626_v33 = vmul.f32 %v601_v31, %v932_v4 }
 0x346   : > { %631 = vst.msk [vmem:[%s170_s11] sm:$0xff] %vm179_vm0, %v623_v32  ;;  %634 = vst.msk [vmem:[%s170_s11 + $0x18] sm:$0xff] %vm179_vm0, %v626_v33 }
 0x347   : > { %v596_v34 = vpop.permute.xlu1 %595 }
 0x348   : > { %v625_v35 = vmul.f32 %v596_v34, %v924_v3  ;;  %v606_v36 = vpop.permute.xlu0 %605 }
 0x349   : > { %v627_v37 = vmul.f32 %v606_v36, %v934_v5 }
 0x34a   : > { %633 = vst.msk [vmem:[%s170_s11 + $0x10] sm:$0xff] %vm179_vm0, %v625_v35 }
 0x34b   : > { %635 = vst.msk [vmem:[%s170_s11 + $0x20] sm:$0xff] %vm179_vm0, %v627_v37  ;;  %v611_v2 = vpop.permute.xlu1 %610 }
 0x34c   : > { %v628_v38 = vmul.f32 %v611_v2, %v940_v6 }
 0x34d   : > { %v616_v1 = vpop.permute.xlu0 %615 }
 0x34e   : > { %636 = vst.msk [vmem:[%s170_s11 + $0x28] sm:$0xff] %vm179_vm0, %v628_v38  ;;  %v629_v4 = vmul.f32 %v616_v1, %v942_v7 }
 0x34f   : > { %v621_v39 = vpop.permute.xlu1 %620 }
 0x350   : > { %v630_v40 = vmul.f32 %v621_v39, %v948_v8  ;;  %637 = vst.msk [vmem:[%s170_s11 + $0x30] sm:$0xff] %vm179_vm0, %v629_v4 }
 0x352   : > { %638 = vst.msk [vmem:[%s170_s11 + $0x38] sm:$0xff] %vm179_vm0, %v630_v40 }
 0x353 PF: > { %s13_s12 = sadd.s32 1, %s877_s12  }
 0x354   : > { %p10_p4 = scmp.ge.s32.totalorder %s13_s12, 4  }
 0x356   :  { %12 = sbr.rel (!%p10_p4) target bundleno = 1 (0x1), region = 62 }

</bundles_post_ra>
